<compile_context>
chip_gen: v5e
topology: v5e:2x2
jax: 0.10.0
libtpu: 0.0.40
codegen_flags: <defaults>
</compile_context>

<pallas_src>
import functools

import jax
import jax.numpy as jnp
from jax import lax
from jax.experimental import pallas as pl
from jax.experimental.pallas import tpu as pltpu

_EPS = 1e-5  # PyTorch default eps for BatchNorm1d and LayerNorm


def _vmem_capacity_bytes():
    """Physical VMEM per core (64 MiB v7x, 128 MiB v5e/v6e); safe fallback."""
    try:
        info = pltpu.get_tpu_info()
        cap = getattr(info, "vmem_capacity_bytes", None)
        if cap:
            return int(cap)
    except Exception:
        pass
    return 64 * 1024 * 1024  # conservative (v7x per-TensorCore)


# ----------------------------------------------------------------------------
# Fused single-pass kernel: whole (B, F) array (and params) in one block.
# ----------------------------------------------------------------------------
def _fused_kernel(x_ref, p_ref, o_ref, *, inv_b, inv_f):
    x = x_ref[...].astype(jnp.float32)                         # (B, F)

    # BatchNorm1d (training statistics, biased variance), centered.
    mean_b = jnp.sum(x, axis=0, keepdims=True) * inv_b         # (1, F)
    xb = x - mean_b
    var_b = jnp.sum(xb * xb, axis=0, keepdims=True) * inv_b
    bn = xb * lax.rsqrt(var_b + _EPS)

    # LayerNorm over features, centered.
    mean_l = jnp.sum(x, axis=1, keepdims=True) * inv_f         # (B, 1)
    xl = x - mean_l
    var_l = jnp.sum(xl * xl, axis=1, keepdims=True) * inv_f
    ln = xl * lax.rsqrt(var_l + _EPS)

    # p rows: [softmax(w)[0]*gamma, softmax(w)[1]*gamma, beta]
    p = p_ref[...]
    o_ref[...] = (p[0:1, :] * bn + p[1:2, :] * ln + p[2:3, :]).astype(o_ref.dtype)


# ----------------------------------------------------------------------------
# Tiled fallback, pass 1: LayerNorm per-row mean / rstd, accumulated over F
# tiles (accumulator pattern).  Grid = (batch tiles [parallel], F tiles).
# ----------------------------------------------------------------------------
def _row_stats_kernel(x_ref, stats_ref, s_acc, ss_acc, *, inv_f, f_real, tf):
    j = pl.program_id(1)

    @pl.when(j == 0)
    def _():
        s_acc[...] = jnp.zeros_like(s_acc)
        ss_acc[...] = jnp.zeros_like(ss_acc)

    x = x_ref[...].astype(jnp.float32)                         # (tb, tf)
    if f_real % tf != 0:
        # Mask the out-of-bounds (garbage) columns of the ragged last F tile.
        col = lax.broadcasted_iota(jnp.int32, x.shape, 1) + j * tf
        x = jnp.where(col < f_real, x, 0.0)

    s_acc[...] += jnp.sum(x, axis=1, keepdims=True)            # (tb, 1)
    ss_acc[...] += jnp.sum(x * x, axis=1, keepdims=True)

    @pl.when(j == pl.num_programs(1) - 1)
    def _():
        mean = s_acc[...] * inv_f
        var = jnp.maximum(ss_acc[...] * inv_f - mean * mean, 0.0)
        stats_ref[...] = jnp.concatenate([mean, lax.rsqrt(var + _EPS)], axis=1)


# ----------------------------------------------------------------------------
# Tiled fallback, pass 2: per-tile BatchNorm stats (full batch in block) +
# adaptive combine + affine.  Grid = (F tiles [parallel],).
# ----------------------------------------------------------------------------
def _combine_kernel(x_ref, p_ref, stats_ref, o_ref, *, inv_b):
    x = x_ref[...].astype(jnp.float32)                         # (B, tf)

    # BatchNorm1d over the full batch dim, centered (no cancellation).
    mean_b = jnp.sum(x, axis=0, keepdims=True) * inv_b         # (1, tf)
    xb = x - mean_b
    var_b = jnp.sum(xb * xb, axis=0, keepdims=True) * inv_b
    bn = xb * lax.rsqrt(var_b + _EPS)

    # LayerNorm with the precomputed per-row stats.
    stats = stats_ref[...]                                     # (B, 2)
    ln = (x - stats[:, 0:1]) * stats[:, 1:2]

    p = p_ref[...]                                             # (3, tf)
    o_ref[...] = (p[0:1, :] * bn + p[1:2, :] * ln + p[2:3, :]).astype(o_ref.dtype)


def adaptive_normalization(x, norm_weights, gamma, beta, *, force_feature_tile=None):
    """x: (B, F) or (B, F, S); norm_weights: (2, F); gamma/beta: (F,)."""
    if x.ndim == 3:
        x = x[:, :, -1]  # last timestep (glue; see TODO at top)
    B, F = x.shape
    out_dtype = x.dtype

    # Fold softmax(norm_weights) and gamma/beta into one (3, F) fp32 param
    # array in the wrapper: tiny F-sized compute, removes 3 DMA streams and the
    # per-tile exp/divide from the kernel.
    w = jax.nn.softmax(norm_weights.astype(jnp.float32), axis=0)          # (2, F)
    params = jnp.concatenate(
        [w * gamma.astype(jnp.float32)[None, :],
         beta.astype(jnp.float32)[None, :]], axis=0)                      # (3, F)

    vmem_cap = _vmem_capacity_bytes()
    x_bytes = B * F * 4
    fused_cap = vmem_cap // 5                      # in+out, double-buffered, headroom
    block_cap = max(512 * 1024, min(8 * 1024 * 1024, vmem_cap // 10))

    # ---------------- Fused single pass (2x HBM traffic) ----------------
    if force_feature_tile is None and x_bytes <= fused_cap:
        vmem_limit = int(min(vmem_cap * 9 // 10,
                             max(32 * 1024 * 1024, 4 * x_bytes + 4 * 1024 * 1024)))
        return pl.pallas_call(
            functools.partial(_fused_kernel, inv_b=1.0 / B, inv_f=1.0 / F),
            out_shape=jax.ShapeDtypeStruct((B, F), out_dtype),
            grid_spec=pltpu.PrefetchScalarGridSpec(
                num_scalar_prefetch=0,
                grid=(1,),
                in_specs=[pl.BlockSpec((B, F), lambda i: (0, 0)),
                          pl.BlockSpec((3, F), lambda i: (0, 0))],
                out_specs=pl.BlockSpec((B, F), lambda i: (0, 0))),
            compiler_params=pltpu.CompilerParams(
                dimension_semantics=("arbitrary",),
                vmem_limit_bytes=vmem_limit),
        )(x, params)

    # ---------------- Tiled two-pass fallback (large F) ----------------
    if force_feature_tile is not None:
        tf = int(force_feature_tile)
    else:
        tf = max(128, (block_cap // (B * 4)) // 128 * 128)
    n_f = pl.cdiv(F, tf)
    block_bytes = B * tf * 4
    vmem_limit = int(min(vmem_cap * 9 // 10,
                         max(32 * 1024 * 1024, 4 * block_bytes + 4 * 1024 * 1024)))

    # Batch-tile pass 1 (only when sublane-aligned) so both v7x TCs are used.
    sub = max(8, 32 // x.dtype.itemsize)           # sublane multiple for dtype
    if B >= 2 * sub and B % (2 * sub) == 0:
        tb, n_b = B // 2, 2
    else:
        tb, n_b = B, 1

    stats = pl.pallas_call(
        functools.partial(_row_stats_kernel, inv_f=1.0 / F, f_real=F, tf=tf),
        out_shape=jax.ShapeDtypeStruct((B, 2), jnp.float32),
        grid_spec=pltpu.PrefetchScalarGridSpec(
            num_scalar_prefetch=0,
            grid=(n_b, n_f),
            in_specs=[pl.BlockSpec((tb, tf), lambda i, j: (i, j))],
            out_specs=pl.BlockSpec((tb, 2), lambda i, j: (i, 0)),
            scratch_shapes=[pltpu.VMEM((tb, 1), jnp.float32),
                            pltpu.VMEM((tb, 1), jnp.float32)]),
        compiler_params=pltpu.CompilerParams(
            dimension_semantics=("parallel", "arbitrary"),
            vmem_limit_bytes=vmem_limit),
    )(x)

    return pl.pallas_call(
        functools.partial(_combine_kernel, inv_b=1.0 / B),
        out_shape=jax.ShapeDtypeStruct((B, F), out_dtype),
        grid_spec=pltpu.PrefetchScalarGridSpec(
            num_scalar_prefetch=0,
            grid=(n_f,),
            in_specs=[pl.BlockSpec((B, tf), lambda j: (0, j)),
                      pl.BlockSpec((3, tf), lambda j: (0, j)),
                      pl.BlockSpec((B, 2), lambda j: (0, 0))],
            out_specs=pl.BlockSpec((B, tf), lambda j: (0, j))),
        compiler_params=pltpu.CompilerParams(
            dimension_semantics=("parallel",),
            vmem_limit_bytes=vmem_limit),
    )(x, params, stats)


def _reference(x, norm_weights, gamma, beta):
    if x.ndim == 3:
        x = x[:, :, -1]
    mb = jnp.mean(x, axis=0, keepdims=True)
    vb = jnp.mean(jnp.square(x - mb), axis=0, keepdims=True)
    bn = (x - mb) / jnp.sqrt(vb + _EPS)
    ml = jnp.mean(x, axis=1, keepdims=True)
    vl = jnp.mean(jnp.square(x - ml), axis=1, keepdims=True)
    ln = (x - ml) / jnp.sqrt(vl + _EPS)
    w = jax.nn.softmax(norm_weights, axis=0)
    out = w[0][None, :] * bn + w[1][None, :] * ln
    return out * gamma[None, :] + beta[None, :]


if __name__ == "__main__":
    key = jax.random.PRNGKey(0)
    k_x, k_w, k_g, k_b, k_x2, k_x3 = jax.random.split(key, 6)

    # 3D path: [batch, features, seq] -> last timestep (fused single pass).
    B, F, S = 8, 32, 8
    x = jax.random.normal(k_x, (B, F, S), dtype=jnp.float32)
    # Parameters mildly perturbed around the PyTorch init (ones(2,F)/2, ones(F),
    # zeros(F)) to exercise the softmax / affine paths.
    norm_weights = 0.5 + 0.1 * jax.random.normal(k_w, (2, F), dtype=jnp.float32)
    gamma = 1.0 + 0.1 * jax.random.normal(k_g, (F,), dtype=jnp.float32)
    beta = 0.1 * jax.random.normal(k_b, (F,), dtype=jnp.float32)

    out = jax.block_until_ready(adaptive_normalization(x, norm_weights, gamma, beta))
    ref = _reference(x, norm_weights, gamma, beta)
    assert out.shape == (B, F)
    assert jnp.allclose(out, ref, rtol=1e-4, atol=1e-4), "mismatch vs reference (3D fused)"

    # 2D path (fused single pass).
    x2d = jax.random.normal(k_x2, (B, F), dtype=jnp.float32)
    out2 = jax.block_until_ready(adaptive_normalization(x2d, norm_weights, gamma, beta))
    ref2 = _reference(x2d, norm_weights, gamma, beta)
    assert jnp.allclose(out2, ref2, rtol=1e-4, atol=1e-4), "mismatch vs reference (2D fused)"

    # Tiled two-pass path with an unaligned feature dim: exercises in-kernel
    # ragged-column masking, write-masked boundary output blocks and the
    # batch-parallel pass-1 grid.
    B3, F3 = 16, 200
    x3 = jax.random.normal(k_x3, (B3, F3), dtype=jnp.float32)
    nw3 = 0.5 + 0.1 * jax.random.normal(k_w, (2, F3), dtype=jnp.float32)
    g3 = 1.0 + 0.1 * jax.random.normal(k_g, (F3,), dtype=jnp.float32)
    b3 = 0.1 * jax.random.normal(k_b, (F3,), dtype=jnp.float32)
    out3 = jax.block_until_ready(
        adaptive_normalization(x3, nw3, g3, b3, force_feature_tile=128))
    ref3 = _reference(x3, nw3, g3, b3)
    assert out3.shape == (B3, F3)
    assert jnp.allclose(out3, ref3, rtol=1e-4, atol=1e-4), "mismatch vs reference (tiled/ragged)"

    print("KERNEL_OK")
</pallas_src>

<mosaic_0001>
module attributes {stable_mosaic.version = 11 : i64} {
  func.func @_fused_kernel(%arg0: i32, %arg1: memref<8x32xf32, #tpu.memory_space<vmem>>, %arg2: memref<3x32xf32, #tpu.memory_space<vmem>>, %arg3: memref<8x32xf32, #tpu.memory_space<vmem>>) attributes {dimension_semantics = [#tpu.dimension_semantics<arbitrary>], iteration_bounds = array<i64: 1>, scalar_prefetch = 0 : i64, scratch_operands = 0 : i64, tpu.core_type = #tpu.core_type<tc>, window_params = [{pipeline_mode = #tpu.pipeline_mode<synchronous>, transform_indices = @transform_0, window_bounds = array<i64: 8, 32>}, {pipeline_mode = #tpu.pipeline_mode<synchronous>, transform_indices = @transform_1, window_bounds = array<i64: 3, 32>}, {pipeline_mode = #tpu.pipeline_mode<synchronous>, transform_indices = @transform_2, window_bounds = array<i64: 8, 32>}]} {
    %c0 = arith.constant 0 : index
    %c0_0 = arith.constant 0 : index
    %0 = vector.load %arg1[%c0, %c0_0] : memref<8x32xf32, #tpu.memory_space<vmem>>, vector<8x32xf32>
    %cst = arith.constant dense<0.000000e+00> : vector<32xf32>
    %1 = vector.multi_reduction <add>, %0, %cst [0] : vector<8x32xf32> to vector<32xf32>
    %2 = vector.shape_cast %1 : vector<32xf32> to vector<1x32xf32>
    %cst_1 = arith.constant 1.250000e-01 : f32
    %3 = vector.broadcast %cst_1 : f32 to vector<1x32xf32>
    %4 = arith.mulf %2, %3 : vector<1x32xf32>
    %5 = vector.broadcast %4 : vector<1x32xf32> to vector<8x32xf32>
    %6 = arith.subf %0, %5 : vector<8x32xf32>
    %7 = arith.mulf %6, %6 : vector<8x32xf32>
    %cst_2 = arith.constant dense<0.000000e+00> : vector<32xf32>
    %8 = vector.multi_reduction <add>, %7, %cst_2 [0] : vector<8x32xf32> to vector<32xf32>
    %9 = vector.shape_cast %8 : vector<32xf32> to vector<1x32xf32>
    %cst_3 = arith.constant 1.250000e-01 : f32
    %10 = vector.broadcast %cst_3 : f32 to vector<1x32xf32>
    %11 = arith.mulf %9, %10 : vector<1x32xf32>
    %cst_4 = arith.constant 9.99999974E-6 : f32
    %12 = vector.broadcast %cst_4 : f32 to vector<1x32xf32>
    %13 = arith.addf %11, %12 : vector<1x32xf32>
    %14 = math.rsqrt %13 : vector<1x32xf32>
    %15 = vector.broadcast %14 : vector<1x32xf32> to vector<8x32xf32>
    %16 = arith.mulf %6, %15 : vector<8x32xf32>
    %cst_5 = arith.constant dense<0.000000e+00> : vector<8xf32>
    %17 = vector.multi_reduction <add>, %0, %cst_5 [1] : vector<8x32xf32> to vector<8xf32>
    %18 = vector.shape_cast %17 : vector<8xf32> to vector<8x1xf32>
    %cst_6 = arith.constant 3.125000e-02 : f32
    %19 = vector.broadcast %cst_6 : f32 to vector<8x1xf32>
    %20 = arith.mulf %18, %19 : vector<8x1xf32>
    %21 = vector.broadcast %20 : vector<8x1xf32> to vector<8x32xf32>
    %22 = arith.subf %0, %21 : vector<8x32xf32>
    %23 = arith.mulf %22, %22 : vector<8x32xf32>
    %cst_7 = arith.constant dense<0.000000e+00> : vector<8xf32>
    %24 = vector.multi_reduction <add>, %23, %cst_7 [1] : vector<8x32xf32> to vector<8xf32>
    %25 = vector.shape_cast %24 : vector<8xf32> to vector<8x1xf32>
    %cst_8 = arith.constant 3.125000e-02 : f32
    %26 = vector.broadcast %cst_8 : f32 to vector<8x1xf32>
    %27 = arith.mulf %25, %26 : vector<8x1xf32>
    %cst_9 = arith.constant 9.99999974E-6 : f32
    %28 = vector.broadcast %cst_9 : f32 to vector<8x1xf32>
    %29 = arith.addf %27, %28 : vector<8x1xf32>
    %30 = math.rsqrt %29 : vector<8x1xf32>
    %31 = vector.broadcast %30 : vector<8x1xf32> to vector<8x32xf32>
    %32 = arith.mulf %22, %31 : vector<8x32xf32>
    %c0_10 = arith.constant 0 : index
    %c0_11 = arith.constant 0 : index
    %33 = vector.load %arg2[%c0_10, %c0_11] : memref<3x32xf32, #tpu.memory_space<vmem>>, vector<3x32xf32>
    %34 = vector.extract_strided_slice %33 {offsets = [0, 0], sizes = [1, 32], strides = [1, 1]} : vector<3x32xf32> to vector<1x32xf32>
    %35 = vector.broadcast %34 : vector<1x32xf32> to vector<8x32xf32>
    %36 = arith.mulf %35, %16 : vector<8x32xf32>
    %37 = vector.extract_strided_slice %33 {offsets = [1, 0], sizes = [1, 32], strides = [1, 1]} : vector<3x32xf32> to vector<1x32xf32>
    %38 = vector.broadcast %37 : vector<1x32xf32> to vector<8x32xf32>
    %39 = arith.mulf %38, %32 : vector<8x32xf32>
    %40 = arith.addf %36, %39 : vector<8x32xf32>
    %41 = vector.extract_strided_slice %33 {offsets = [2, 0], sizes = [1, 32], strides = [1, 1]} : vector<3x32xf32> to vector<1x32xf32>
    %42 = vector.broadcast %41 : vector<1x32xf32> to vector<8x32xf32>
    %43 = arith.addf %40, %42 : vector<8x32xf32>
    %c0_12 = arith.constant 0 : index
    %c0_13 = arith.constant 0 : index
    %44 = vector.load %arg3[%c0_12, %c0_13] : memref<8x32xf32, #tpu.memory_space<vmem>>, vector<8x32xf32>
    tpu.vector_store %arg3[%c0_12, %c0_13], %43 {strides = array<i32>} : memref<8x32xf32, #tpu.memory_space<vmem>>, vector<8x32xf32>,
    return
  }
  func.func @transform_0(%arg0: i32) -> (i32, i32) {
    %c0_i32 = arith.constant 0 : i32
    %c0_i32_0 = arith.constant 0 : i32
    %c0_i32_1 = arith.constant 0 : i32
    return %c0_i32, %c0_i32_0 : i32, i32
  }
  func.func @transform_1(%arg0: i32) -> (i32, i32) {
    %c0_i32 = arith.constant 0 : i32
    %c0_i32_0 = arith.constant 0 : i32
    %c0_i32_1 = arith.constant 0 : i32
    return %c0_i32, %c0_i32_0 : i32, i32
  }
  func.func @transform_2(%arg0: i32) -> (i32, i32) {
    %c0_i32 = arith.constant 0 : i32
    %c0_i32_0 = arith.constant 0 : i32
    %c0_i32_1 = arith.constant 0 : i32
    return %c0_i32, %c0_i32_0 : i32, i32
  }
}

</mosaic_0001>

<bundles_post_ra>
// kernel: tpu_custom_call.1
= control target key start
LH: loop header
LB: loop body
LE: loop exit
PB: predicated region body
PF: predicated region fallthrough
CT: control target
= control target key end

     0   :  { %7 = vsyncpa [#allocation3], 0  ;;  %s236_s0 = inlined_call_operand.hbm [shape: f32[8,32], index: 0, kind: input, shape index: {}]   ;;  %s237_s1 = inlined_call_operand.hbm [shape: f32[3,32], index: 1, kind: input, shape index: {}]   ;;  %s238_s2 = inlined_call_operand.hbm [shape: f32[8,32], index: 2, kind: output, shape index: {}]  }
   0x1   :  { %8 = vsyncpa [#allocation6], 0 }
   0x2   :  { %9 = vsyncpa [#allocation4], 0  ;;  %s15_s11 = sshll.u32 %s236_s0, 4  ;;  %s205_s12 = smov [#allocation2]   ;;  %s16_s11 = int_to_ptr.hbm [resolvable:$true] %s15_s11 }
   0x3   :  { %s17_s13 = sshll.u32 %s205_s12, 4  ;;  %s26_s16 = sshll.u32 %s237_s1, 4  ;;  %s18_s13 = int_to_ptr.vmem [resolvable:$true] %s17_s13  ;;  %s27_s16 = int_to_ptr.hbm [resolvable:$true] %s26_s16 }
   0x4   :  { %20 = dma.hbm_to_vmem [thread:$0]  %s16_s11, 128, %s18_s13, [#allocation3]  }
   0x5   :  { %s206_s17 = smov [#allocation5]  }
   0x6   :  { %s28_s18 = sshll.u32 %s206_s17, 4  ;;  %s29_s18 = int_to_ptr.vmem [resolvable:$true] %s28_s18 }
   0x7   :  { %31 = dma.hbm_to_vmem [thread:$0]  %s27_s16, 64, %s29_s18, [#allocation6]  }
   0x8   :  { %199 = dma.done.wait [#allocation3], 128  }
   0x9   :  { %200 = vsyncadd [#allocation3], 4294967168 }
   0xa   :  { %201 = dma.done.wait [#allocation6], 64  }
   0xb   :  { %202 = vsyncadd [#allocation6], 4294967232  ;;  %vm41_vm0 = vcmask 261120   ;;  %v40_v0 = vld [vmem:[#allocation2] sm:$0xff]  ;;  %v93_v37 = vld [vmem:[#allocation5] sm:$0x7] }
   0xc   :  { %v42_v1 = vsel %vm41_vm0, %v40_v0, 0.0  ;;  %v94_v41 = vperm.slane %v93_v37, 0  ;;  %v96_v44 = vperm.slane %v93_v37, 1  ;;  %v99_v49 = vperm.slane %v93_v37, 2  ;;  %s207_s0 = smov [#allocation7]   ;;  %s109_s21 = sshll.u32 %s238_s2, 4  ;;  %s110_s21 = int_to_ptr.hbm [resolvable:$true] %s109_s21 }
   0xd   :  { %72 = vadd.xlane.f32.xlu0 %v42_v1  ;;  %v43_v7 = vrot.slane %v42_v1, 4  ;;  %s107_s1 = sshll.u32 %s207_s0, 4  ;;  %s108_s1 = int_to_ptr.vmem [resolvable:$true] %s107_s1 }
   0xf   :  { %v44_v8 = vadd.f32 %v43_v7, %v42_v1 }
  0x11   :  { %v45_v9 = vrot.slane %v44_v8, 2 }
  0x13   :  { %v46_v10 = vadd.f32 %v45_v9, %v44_v8 }
  0x15   :  { %v47_v11 = vrot.slane %v46_v10, 1 }
  0x17   :  { %v48_v12 = vadd.f32 %v47_v11, %v46_v10 }
  0x19   :  { %v49_v13 = vmul.f32 0.125, %v48_v12 }
  0x1b   :  { %v50_v14 = vsub.f32 %v40_v0, %v49_v13 }
  0x1d   :  { %v51_v15 = vmul.f32 %v50_v14, %v50_v14 }
  0x1f   :  { %v52_v16 = vsel %vm41_vm0, %v51_v15, 0.0 }
  0x20   :  { %v53_v17 = vrot.slane %v52_v16, 4 }
  0x22   :  { %v54_v18 = vadd.f32 %v53_v17, %v52_v16 }
  0x24   :  { %v55_v19 = vrot.slane %v54_v18, 2 }
  0x26   :  { %v56_v20 = vadd.f32 %v55_v19, %v54_v18 }
  0x28   :  { %v57_v21 = vrot.slane %v56_v20, 1 }
  0x2a   :  { %v58_v22 = vadd.f32 %v57_v21, %v56_v20 }
  0x2c   :  { %v59_v23 = vmul.f32 0.125, %v58_v22 }
  0x2e   :  { %v60_v24 = vadd.f32 1e-05, %v59_v23 }
  0x30   :  { %123 = vrsqrt.f32 %v60_v24  ;;  %vm67_vm1 = vweird.f32 %v60_v24 }
  0x36   :  { %v124_v25 = vpop.eup %123 }
  0x37   :  { %v62_v26 = vmul.f32 %v124_v25, %v60_v24  ;;  %vm68_vm2 = vweird.f32 %v124_v25 }
  0x38   :  { %vm69_vm3 = vmor %vm67_vm1, %vm68_vm2 }
  0x39   :  { %v63_v27 = vmul.f32 %v124_v25, %v62_v26 }
  0x3b   :  { %v64_v31 = vmul.f32 0.5, %v63_v27 }
  0x3d   :  { %v65_v32 = vsub.f32 1.5, %v64_v31 }
  0x3f   :  { %v66_v34 = vmul.f32 %v124_v25, %v65_v32 }
  0x41   :  { %v70_v38 = vsel %vm69_vm3, %v124_v25, %v66_v34 }
  0x42   :  { %v71_v42 = vmul.f32 %v70_v38, %v50_v14 }
  0x44   :  { %v95_v46 = vmul.f32 %v94_v41, %v71_v42 }
  0x80   :  { %v73_v2 = vpop.xlane.xlu0 %72 }
  0x81   :  { %v74_v3 = vmul.f32 0.03125, %v73_v2 }
  0x83   :  { %v75_v4 = vsub.f32 %v40_v0, %v74_v3 }
  0x85   :  { %v76_v5 = vmul.f32 %v75_v4, %v75_v4 }
  0x87   :  { %v77_v6 = vsel %vm41_vm0, %v76_v5, 0.0 }
  0x88   :  { %78 = vadd.xlane.f32.xlu0 %v77_v6 }
  0xfb   :  { %v79_v28 = vpop.xlane.xlu0 %78 }
  0xfc   :  { %v80_v29 = vmul.f32 0.03125, %v79_v28 }
  0xfe   :  { %v81_v30 = vadd.f32 1e-05, %v80_v29 }
 0x100   :  { %125 = vrsqrt.f32 %v81_v30  ;;  %vm88_vm5 = vweird.f32 %v81_v30 }
 0x106   :  { %v126_v33 = vpop.eup %125 }
 0x107   :  { %v83_v35 = vmul.f32 %v126_v33, %v81_v30  ;;  %vm89_vm4 = vweird.f32 %v126_v33 }
 0x108   :  { %vm90_vm6 = vmor %vm88_vm5, %vm89_vm4 }
 0x109   :  { %v84_v36 = vmul.f32 %v126_v33, %v83_v35 }
 0x10b   :  { %v85_v39 = vmul.f32 0.5, %v84_v36 }
 0x10d   :  { %v86_v40 = vsub.f32 1.5, %v85_v39 }
 0x10f   :  { %v87_v43 = vmul.f32 %v126_v33, %v86_v40 }
 0x111   :  { %v91_v45 = vsel %vm90_vm6, %v126_v33, %v87_v43 }
 0x112   :  { %v92_v47 = vmul.f32 %v91_v45, %v75_v4 }
 0x114   :  { %v97_v48 = vmul.f32 %v96_v44, %v92_v47 }
 0x116   :  { %v98_v50 = vadd.f32 %v97_v48, %v95_v46 }
 0x118   :  { %v100_v51 = vadd.f32 %v99_v49, %v98_v50 }
 0x11a   :  { %101 = vst.msk [vmem:[#allocation7] sm:$0xff] %vm41_vm0, %v100_v51 }
 0x11b   :  { %112 = dma.vmem_to_hbm [thread:$0]  %s108_s1, 128, %s110_s21, [#allocation4]  }
 0x11c   :  { %203 = dma.done.wait [#allocation4], 128  }
 0x11d   :  { %204 = vsyncadd [#allocation4], 4294967168 }
 0x11e   :  { %117 = vsyncpa [#allocation3], 1 }
 0x11f   :  { %118 = vsyncpa [#allocation6], 1 }
 0x120   :  { %119 = vsyncpa [#allocation4], 1 }

</bundles_post_ra>
